<compile_context>
chip_gen: v6e
topology: v6e:2x2x1
jax: 0.10.0
libtpu: 0.0.40
codegen_flags: <defaults>
</compile_context>

<pallas_src>
import math

import jax
import jax.numpy as jnp
from jax.experimental import pallas as pl
from jax.experimental.pallas import tpu as pltpu

_VMEM_LIMIT = 32 * 1024 * 1024  # <= scoped/physical VMEM on v5e/v6e/v7x


def _affine_kernel(coef_ref, x_ref, o_ref):
    # coef: (2, rr, L) stacked per-feature coefficients [a; b]
    # x/o : (tb, rr, L).  Broadcasting over the leading batch-tile dim
    # implements torch's expand(batch_size, *output_shape).
    o_ref[...] = coef_ref[0] * x_ref[...] + coef_ref[1]


def _largest_divisor_leq(n, cap):
    cap = max(1, min(n, cap))
    for d in range(cap, 0, -1):
        if n % d == 0:
            return d
    return 1


def _plan_tiling(B, F, itemsize, target_block_bytes):
    """Pick (L, R, tb, rr): x viewed as (B, R, L), blocks of (tb, rr, L).

    L: lane width (multiple of 128 dividing F); R = F // L rows per sample
    (multiple of 8 when possible, so sublanes are dense even for tiny B);
    tb samples / rr rows per block sized toward target_block_bytes.
    Returns None if F has no multiple-of-128 divisor (caller uses 2-D fallback).
    """
    L = None           # largest lane width giving sublane-dense rows
    L_fallback = None  # largest multiple-of-128 divisor of F
    for cand in range(128, F + 1, 128):
        if F % cand != 0:
            continue
        L_fallback = cand
        if (F // cand) % 8 == 0 and cand * 8 * itemsize <= target_block_bytes:
            L = cand
    if L is None:
        L = L_fallback
    if L is None:
        return None

    R = F // L
    sample_bytes = F * itemsize
    if R % 8 == 0 and sample_bytes > target_block_bytes:
        # One sample exceeds the block budget: tile rows within a sample.
        tb = 1
        max_rr_groups = max(1, target_block_bytes // (8 * L * itemsize))
        rr = 8 * _largest_divisor_leq(R // 8, max_rr_groups)
    else:
        # Whole samples per block; pack as many as fit the budget.
        rr = R
        tb = _largest_divisor_leq(B, max(1, target_block_bytes // sample_bytes))
    return L, R, tb, rr


def convex_noise_combiner(x, unsquashed_weights, noise_mean, noise_std,
                          *, target_block_bytes=2 * 1024 * 1024):
    """x: (B, *output_shape); uw: (1, *output_shape); mean/std: output_shape."""
    B = x.shape[0]
    F = math.prod(x.shape[1:])
    dtype = x.dtype
    itemsize = jnp.dtype(dtype).itemsize

    # Fold sigmoid + convex combination into an affine map  o = a * x + b.
    # Compute in f32 (matches the fp32 parameters of the torch module).
    uw = unsquashed_weights.reshape(F).astype(jnp.float32)
    mean = noise_mean.reshape(F).astype(jnp.float32)
    std = noise_std.reshape(F).astype(jnp.float32)
    w = jax.nn.sigmoid(uw)
    a = (1.0 - w).astype(dtype)
    b = (w * (std * w + mean)).astype(dtype)
    coef = jnp.stack([a, b], axis=0)  # (2, F)

    plan = _plan_tiling(B, F, itemsize, target_block_bytes)
    if plan is None:
        # Feature size not lane-aligned: 2-D layout, tile over batch only.
        sample_bytes = F * itemsize
        tb = B
        if B % 8 == 0 and B * sample_bytes > target_block_bytes:
            cap = max(1, target_block_bytes // (8 * sample_bytes))
            tb = 8 * _largest_divisor_leq(B // 8, cap)
        x_spec = pl.BlockSpec((tb, F), lambda i: (i, 0))
        coef_spec = pl.BlockSpec((2, F), lambda i: (0, 0))
        out = pl.pallas_call(
            _affine_kernel,
            out_shape=jax.ShapeDtypeStruct((B, F), dtype),
            grid_spec=pltpu.PrefetchScalarGridSpec(
                num_scalar_prefetch=0,
                grid=(B // tb,),
                in_specs=[coef_spec, x_spec],
                out_specs=x_spec,
            ),
            compiler_params=pltpu.CompilerParams(
                dimension_semantics=("parallel",),
                vmem_limit_bytes=_VMEM_LIMIT,
            ),
        )(coef, x.reshape(B, F))
        return out.reshape(x.shape)

    L, R, tb, rr = plan
    # Batch axis innermost: the coefficient block index is independent of it,
    # so the coefficient tile is DMA'd once per feature-row tile and stays
    # resident in VMEM while x streams through.
    grid = (R // rr, B // tb)
    x_spec = pl.BlockSpec((tb, rr, L), lambda r, i: (i, r, 0))
    coef_spec = pl.BlockSpec((2, rr, L), lambda r, i: (0, r, 0))

    out = pl.pallas_call(
        _affine_kernel,
        out_shape=jax.ShapeDtypeStruct((B, R, L), dtype),
        grid_spec=pltpu.PrefetchScalarGridSpec(
            num_scalar_prefetch=0,
            grid=grid,
            in_specs=[coef_spec, x_spec],
            out_specs=x_spec,
        ),
        compiler_params=pltpu.CompilerParams(
            dimension_semantics=("parallel", "parallel"),
            vmem_limit_bytes=_VMEM_LIMIT,
        ),
    )(coef.reshape(2, R, L), x.reshape(B, R, L))
    return out.reshape(x.shape)


def _reference(x, unsquashed_weights, noise_mean, noise_std):
    w = jax.nn.sigmoid(unsquashed_weights)                 # (1, *output_shape)
    w = jnp.broadcast_to(w, x.shape)
    noise = noise_std[None] * w + noise_mean[None]
    return (1.0 - w) * x + w * noise


if __name__ == "__main__":
    key = jax.random.PRNGKey(0)
    B, C, H, W = 2, 4, 16, 16
    output_shape = (C, H, W)

    # Deterministic inputs / parameters (no checkpoint load).
    x = jax.random.normal(key, (B, C, H, W), dtype=jnp.float32)

    # Module __init__: noise_mean / noise_std as float scalars broadcast to output_shape.
    noise_mean = jnp.full(output_shape, 0.1, dtype=jnp.float32)
    noise_std = jnp.full(output_shape, 0.5, dtype=jnp.float32)
    # init_weights(): nn.init.constant_(unsquashed_weights, 0.0), shape (1, *output_shape).
    unsquashed_weights = jnp.zeros((1,) + output_shape, dtype=jnp.float32)

    out = convex_noise_combiner(x, unsquashed_weights, noise_mean, noise_std)
    out = jax.block_until_ready(out)

    ref = _reference(x, unsquashed_weights, noise_mean, noise_std)
    assert out.shape == (B, C, H, W)
    assert jnp.allclose(out, ref, atol=1e-6, rtol=1e-6), "mismatch vs reference"

    print("KERNEL_OK")
</pallas_src>

<mosaic_0001>
module attributes {stable_mosaic.version = 11 : i64} {
  func.func @_affine_kernel(%arg0: i32, %arg1: i32, %arg2: memref<2x8x128xf32, #tpu.memory_space<vmem>>, %arg3: memref<2x8x128xf32, #tpu.memory_space<vmem>>, %arg4: memref<2x8x128xf32, #tpu.memory_space<vmem>>) attributes {dimension_semantics = [#tpu.dimension_semantics<parallel>, #tpu.dimension_semantics<parallel>], iteration_bounds = array<i64: 1, 1>, scalar_prefetch = 0 : i64, scratch_operands = 0 : i64, tpu.core_type = #tpu.core_type<tc>, window_params = [{transform_indices = @transform_0, window_bounds = array<i64: 2, 8, 128>}, {transform_indices = @transform_1, window_bounds = array<i64: 2, 8, 128>}, {transform_indices = @transform_2, window_bounds = array<i64: 2, 8, 128>}]} {
    %c0 = arith.constant 0 : index
    %c0_0 = arith.constant 0 : index
    %c0_1 = arith.constant 0 : index
    %0 = vector.load %arg2[%c0, %c0_0, %c0_1] : memref<2x8x128xf32, #tpu.memory_space<vmem>>, vector<1x8x128xf32>
    %1 = vector.shape_cast %0 : vector<1x8x128xf32> to vector<8x128xf32>
    %c0_2 = arith.constant 0 : index
    %c0_3 = arith.constant 0 : index
    %c0_4 = arith.constant 0 : index
    %2 = vector.load %arg3[%c0_2, %c0_3, %c0_4] : memref<2x8x128xf32, #tpu.memory_space<vmem>>, vector<2x8x128xf32>
    %3 = vector.shape_cast %1 : vector<8x128xf32> to vector<1x8x128xf32>
    %4 = vector.broadcast %3 : vector<1x8x128xf32> to vector<2x8x128xf32>
    %5 = arith.mulf %4, %2 : vector<2x8x128xf32>
    %c1 = arith.constant 1 : index
    %c0_5 = arith.constant 0 : index
    %c0_6 = arith.constant 0 : index
    %6 = vector.load %arg2[%c1, %c0_5, %c0_6] : memref<2x8x128xf32, #tpu.memory_space<vmem>>, vector<1x8x128xf32>
    %7 = vector.shape_cast %6 : vector<1x8x128xf32> to vector<8x128xf32>
    %8 = vector.shape_cast %7 : vector<8x128xf32> to vector<1x8x128xf32>
    %9 = vector.broadcast %8 : vector<1x8x128xf32> to vector<2x8x128xf32>
    %10 = arith.addf %5, %9 : vector<2x8x128xf32>
    %c0_7 = arith.constant 0 : index
    %c0_8 = arith.constant 0 : index
    %c0_9 = arith.constant 0 : index
    %11 = vector.load %arg4[%c0_7, %c0_8, %c0_9] : memref<2x8x128xf32, #tpu.memory_space<vmem>>, vector<2x8x128xf32>
    tpu.vector_store %arg4[%c0_7, %c0_8, %c0_9], %10 {strides = array<i32>} : memref<2x8x128xf32, #tpu.memory_space<vmem>>, vector<2x8x128xf32>,
    return
  }
  func.func @transform_0(%arg0: i32, %arg1: i32) -> (i32, i32, i32) {
    %c0_i32 = arith.constant 0 : i32
    %c0_i32_0 = arith.constant 0 : i32
    %c0_i32_1 = arith.constant 0 : i32
    return %c0_i32, %arg0, %c0_i32_0 : i32, i32, i32
  }
  func.func @transform_1(%arg0: i32, %arg1: i32) -> (i32, i32, i32) {
    %c0_i32 = arith.constant 0 : i32
    %c0_i32_0 = arith.constant 0 : i32
    return %arg1, %arg0, %c0_i32 : i32, i32, i32
  }
  func.func @transform_2(%arg0: i32, %arg1: i32) -> (i32, i32, i32) {
    %c0_i32 = arith.constant 0 : i32
    %c0_i32_0 = arith.constant 0 : i32
    return %arg1, %arg0, %c0_i32 : i32, i32, i32
  }
}

</mosaic_0001>

<bundles_post_ra>
// kernel: tpu_custom_call.1
= control target key start
LH: loop header
LB: loop body
LE: loop exit
PB: predicated region body
PF: predicated region fallthrough
CT: control target
= control target key end

     0   :  { %7 = vsyncpa [#allocation3], 0  ;;  %s178_s0 = inlined_call_operand.hbm [shape: f32[2,8,128], index: 0, kind: input, shape index: {}]   ;;  %s179_s1 = inlined_call_operand.hbm [shape: f32[2,8,128], index: 1, kind: input, shape index: {}]   ;;  %s180_s2 = inlined_call_operand.hbm [shape: f32[2,8,128], index: 2, kind: output, shape index: {}]  }
   0x1   :  { %8 = vsyncpa [#allocation6], 0 }
   0x2   :  { %9 = vsyncpa [#allocation4], 0  ;;  %s140_s9 = smov [#allocation2]  }
   0x3   :  { %s15_s10 = sshll.u32 %s140_s9, 4  ;;  %s16_s10 = int_to_ptr.vmem [resolvable:$true] %s15_s10 }
   0x4   :  { %s82_s11 = scalar_lea.vmem %s16_s10, 256  ;;  %p87_p1 = scmp.lt.s32.totalorder %s16_s10, %s16_s10 }
   0x5   :  { %p83_p0 = scmp.ne.s32.totalorder %s16_s10, %s82_s11  ;;  %p88_p2 = scmp.lt.s32.totalorder %s82_s11, %s82_s11 }
   0x7   :  { %p89_p3 = por %p88_p2, %p87_p1 }
   0x9   :  { %p90_p4 = pnand %p89_p3, %p83_p0 }
   0xb   :  { %93 = shalt.err (!%p90_p4)
}
   0xc   :  { %s141_s12 = smov 128   ;;  %s142_s13 = smov 8  }
   0xd   :  { %21 = dma.hbm_to_vmem [thread:$0]  %s178_s0, 256, %s16_s10, [#allocation3], %s141_s12, %s141_s12, %s142_s13  }
   0xe   :  { %s143_s16 = smov [#allocation5]  }
   0xf   :  { %s27_s17 = sshll.u32 %s143_s16, 4  ;;  %s28_s17 = int_to_ptr.vmem [resolvable:$true] %s27_s17 }
  0x10   :  { %s102_s18 = scalar_lea.vmem %s28_s17, 256  ;;  %p107_p6 = scmp.lt.s32.totalorder %s28_s17, %s28_s17 }
  0x11   :  { %p103_p5 = scmp.ne.s32.totalorder %s28_s17, %s102_s18  ;;  %p108_p7 = scmp.lt.s32.totalorder %s102_s18, %s102_s18 }
  0x13   :  { %p109_p8 = por %p108_p7, %p107_p6 }
  0x15   :  { %p110_p9 = pnand %p109_p8, %p103_p5 }
  0x17   :  { %113 = shalt.err (!%p110_p9)
}
  0x18   :  { %33 = dma.hbm_to_vmem [thread:$0]  %s179_s1, 256, %s28_s17, [#allocation6], %s141_s12, %s141_s12, %s142_s13  }
  0x19   :  { %134 = dma.done.wait [#allocation3], 256  }
  0x1a   :  { %135 = vsyncadd [#allocation3], 4294967040 }
  0x1b   :  { %136 = dma.done.wait [#allocation6], 256  }
  0x1c   :  { %137 = vsyncadd [#allocation6], 4294967040  ;;  %v40_v0 = vld [vmem:[#allocation2] sm:$0xff]  ;;  %v41_v1 = vld [vmem:[#allocation5] sm:$0xff]  ;;  %s144_s0 = smov [#allocation7]  }
  0x1d   :  { %v46_v2 = vld [vmem:[#allocation2 + $0x8] sm:$0xff]  ;;  %v43_v3 = vmul.f32 %v41_v1, %v40_v0  ;;  %v42_v4 = vld [vmem:[#allocation5 + $0x8] sm:$0xff]  ;;  %s56_s21 = sshll.u32 %s144_s0, 4  ;;  %s57_s21 = int_to_ptr.vmem [resolvable:$true] %s56_s21 }
  0x1e   :  { %v44_v5 = vmul.f32 %v42_v4, %v40_v0  ;;  %s114_s22 = scalar_lea.vmem %s57_s21, 256  ;;  %p119_p11 = scmp.lt.s32.totalorder %s57_s21, %s57_s21 }
  0x1f   :  { %v47_v6 = vadd.f32 %v46_v2, %v43_v3  ;;  %p115_p10 = scmp.ne.s32.totalorder %s57_s21, %s114_s22  ;;  %p120_p12 = scmp.lt.s32.totalorder %s114_s22, %s114_s22 }
  0x20   :  { %v48_v7 = vadd.f32 %v46_v2, %v44_v5 }
  0x21   :  { %49 = vst [vmem:[#allocation7] sm:$0xff] %v47_v6  ;;  %p121_p13 = por %p120_p12, %p119_p11 }
  0x22   :  { %50 = vst [vmem:[#allocation7 + $0x8] sm:$0xff] %v48_v7 }
  0x23   :  { %p122_p0 = pnand %p121_p13, %p115_p10 }
  0x25   :  { %125 = shalt.err (!%p122_p0)
}
  0x26   :  { %62 = dma.vmem_to_hbm [thread:$0]  %s57_s21, 256, %s180_s2, [#allocation4], %s141_s12, %s141_s12, %s142_s13  }
  0x27   :  { %138 = dma.done.wait [#allocation4], 256  }
  0x28   :  { %139 = vsyncadd [#allocation4], 4294967040 }
  0x29   :  { %66 = vsyncpa [#allocation3], 1 }
  0x2a   :  { %67 = vsyncpa [#allocation6], 1 }
  0x2b   :  { %68 = vsyncpa [#allocation4], 1 }

</bundles_post_ra>
